<compile_context>
chip_gen: v6e
topology: v6e:2x2x1
jax: 0.10.0
libtpu: 0.0.40
codegen_flags: <defaults>
</compile_context>

<pallas_src>
import functools
import math

import jax
import jax.numpy as jnp
from jax import lax
from jax.experimental import pallas as pl
from jax.experimental.pallas import tpu as pltpu

_LANES = 128
_SUBLANES = 8

_REDUCE_BLOCK_ROWS = 8192              # 4 MiB f32 per reduce input buffer
_FUSED_TILE_BYTES = 2 * 1024 * 1024    # per-stream VMEM tile budget (incl. sublane pad)
_STYLE_TILE_BYTES = 2 * 1024 * 1024    # per-feature VMEM tile budget
_STYLE_MAX_HW_TILE = 8192
_VMEM_LIMIT_BYTES = 32 * 1024 * 1024   # explicit scoped-VMEM limit, safe on v5e/v6e/v7x
_MIN_PALLAS_ELEMS = 16384              # below this, XLA's fused reduce beats a launch


def _cdiv(a, b):
    return -(-a // b)


def _round_up(x, m):
    return _cdiv(x, m) * m


# --------------------------------------------------------------------------------------
# Generic streaming sum-of-f(x) reduction (bpp log-sum, hinge GAN loss, -x mean).
# --------------------------------------------------------------------------------------
def _reduce_map(x, mode):
    if mode == "log":
        return jnp.log(x)
    if mode == "neg":
        return -x
    if mode == "hinge_real":
        return jnp.maximum(1.0 - x, 0.0)
    if mode == "hinge_fake":
        return jnp.maximum(1.0 + x, 0.0)
    raise ValueError(f"unknown reduce mode {mode}")


def _reduce_kernel(x_ref, part_ref, *, mode, rows, block_rows, ragged):
    x = x_ref[...].astype(jnp.float32)

    def write(v):
        part_ref[...] = v.reshape(block_rows // _SUBLANES, _SUBLANES, _LANES
                                  ).sum(axis=0)[None]

    if not ragged:                       # steady state: no masking at all
        write(_reduce_map(x, mode))
    else:
        i = pl.program_id(0)
        last = pl.num_programs(0) - 1

        @pl.when(i < last)
        def _():
            write(_reduce_map(x, mode))

        @pl.when(i == last)              # only the last block carries out-of-range rows
        def _():
            r = lax.broadcasted_iota(jnp.int32, (block_rows, _LANES), 0)
            valid = (i * block_rows + r) < rows
            neutral = jnp.float32(1.0 if mode == "log" else 0.0)
            xs = jnp.where(valid, x, neutral)
            # keep the where AFTER the compute (select, not arithmetic masking)
            write(jnp.where(valid, _reduce_map(xs, mode), 0.0))


def _reduce_sum(x, mode):
    """sum(f(x)); Pallas streaming reduce for large lane-aligned tensors, plain XLA
    otherwise (perf feedback: launch overhead / pad pass dominates tiny tensors)."""
    total = x.size
    if total < _MIN_PALLAS_ELEMS or total % _LANES != 0:
        return jnp.sum(_reduce_map(jnp.reshape(x, (-1,)).astype(jnp.float32), mode))

    rows = total // _LANES
    slab = jnp.reshape(x, (rows, _LANES))          # metadata-only reshape, no HBM pad pass
    # >=2 grid steps when possible so both v7x TensorCores get work.
    block_rows = min(_REDUCE_BLOCK_ROWS, _round_up(_cdiv(rows, 2), _SUBLANES))
    grid = _cdiv(rows, block_rows)
    ragged = rows % block_rows != 0

    kernel = functools.partial(_reduce_kernel, mode=mode, rows=rows,
                               block_rows=block_rows, ragged=ragged)
    itemsize = x.dtype.itemsize
    parts = pl.pallas_call(
        kernel,
        out_shape=jax.ShapeDtypeStruct((grid, _SUBLANES, _LANES), jnp.float32),
        grid_spec=pltpu.PrefetchScalarGridSpec(
            num_scalar_prefetch=0,
            grid=(grid,),
            in_specs=[pl.BlockSpec((block_rows, _LANES), lambda i: (i, 0))],
            out_specs=pl.BlockSpec((1, _SUBLANES, _LANES), lambda i: (i, 0, 0))),
        compiler_params=pltpu.CompilerParams(
            dimension_semantics=("parallel",),
            vmem_limit_bytes=_VMEM_LIMIT_BYTES),
        cost_estimate=pl.CostEstimate(
            flops=int(2 * total),
            transcendentals=int(total if mode == "log" else 0),
            bytes_accessed=int(total * itemsize + grid * _SUBLANES * _LANES * 4)),
    )(slab)
    return jnp.sum(parts)


# --------------------------------------------------------------------------------------
# Fused distortion kernel: x_tidle composite + charbonnier sum + masked-MSE sum
# in a single HBM pass.  The mask is read once per (n, hw-tile) and broadcast across
# channels inside the kernel (no materialized broadcast in HBM).
# --------------------------------------------------------------------------------------
def _fused_kernel(xh_ref, tg_ref, mk_ref, xt_ref, charb_ref, face_ref, *,
                  eps2, hw, hw_tile, ragged):
    xh = xh_ref[0].astype(jnp.float32)                                  # (C, hw_tile)
    tg = tg_ref[0].astype(jnp.float32)
    mk = jnp.broadcast_to(mk_ref[0].astype(jnp.float32), xh.shape)      # channel bcast
    om = 1.0 - mk

    xt_ref[0] = (mk * tg + om * xh).astype(xt_ref.dtype)

    charb = jnp.sqrt((om * xh - tg) ** 2 + eps2)
    d = mk * (tg - xh)
    face = d * d

    def write(c, f):
        charb_ref[...] = jnp.broadcast_to(jnp.sum(c), charb_ref.shape)
        face_ref[...] = jnp.broadcast_to(jnp.sum(f), face_ref.shape)

    if not ragged:
        write(charb, face)
    else:
        t = pl.program_id(1)
        last = pl.num_programs(1) - 1

        @pl.when(t < last)
        def _():
            write(charb, face)

        @pl.when(t == last)              # only the last hw tile has out-of-range lanes
        def _():
            col = lax.broadcasted_iota(jnp.int32, charb.shape, charb.ndim - 1)
            valid = (t * hw_tile + col) < hw
            zero = jnp.zeros_like(charb)
            write(jnp.where(valid, charb, zero), jnp.where(valid, face, zero))


def _fused_distortion(x_hat, target, mask, eps):
    N, C, H, W = x_hat.shape
    HW = H * W
    if mask.ndim == 3:
        mask = mask[:, None]
    if mask.dtype == jnp.bool_:
        mask = mask.astype(x_hat.dtype)
    Cm = mask.shape[1]

    xh = x_hat.reshape(N, C, HW)
    tg = target.reshape(N, C, HW)
    mk = mask.reshape(N, Cm, HW)

    if HW % _LANES != 0:
        hw_tile = HW                                    # full extent fallback (rare)
    else:
        sub = _round_up(C, _SUBLANES)                   # VMEM sublane padding of C dim
        hw_cap = max(_LANES, (_FUSED_TILE_BYTES // (4 * sub)) // _LANES * _LANES)
        hw_tile = min(HW, hw_cap)
    T = _cdiv(HW, hw_tile)
    ragged = HW % hw_tile != 0

    itemsize = x_hat.dtype.itemsize
    kernel = functools.partial(_fused_kernel, eps2=float(eps) ** 2, hw=HW,
                               hw_tile=hw_tile, ragged=ragged)
    xt, charb_p, face_p = pl.pallas_call(
        kernel,
        out_shape=(
            jax.ShapeDtypeStruct((N, C, HW), x_hat.dtype),
            jax.ShapeDtypeStruct((N, T, 1, _LANES), jnp.float32),
            jax.ShapeDtypeStruct((N, T, 1, _LANES), jnp.float32),
        ),
        grid_spec=pltpu.PrefetchScalarGridSpec(
            num_scalar_prefetch=0,
            grid=(N, T),
            in_specs=[
                pl.BlockSpec((1, C, hw_tile), lambda n, t: (n, 0, t)),
                pl.BlockSpec((1, C, hw_tile), lambda n, t: (n, 0, t)),
                pl.BlockSpec((1, Cm, hw_tile), lambda n, t: (n, 0, t)),
            ],
            out_specs=(
                pl.BlockSpec((1, C, hw_tile), lambda n, t: (n, 0, t)),
                pl.BlockSpec((1, 1, 1, _LANES), lambda n, t: (n, t, 0, 0)),
                pl.BlockSpec((1, 1, 1, _LANES), lambda n, t: (n, t, 0, 0)),
            )),
        compiler_params=pltpu.CompilerParams(
            dimension_semantics=("parallel", "parallel"),
            vmem_limit_bytes=_VMEM_LIMIT_BYTES),
        cost_estimate=pl.CostEstimate(
            flops=int(12 * N * C * HW),
            transcendentals=int(N * C * HW),
            bytes_accessed=int((3 * C + Cm) * N * HW * itemsize)),
    )(xh, tg, mk)

    x_tidle = xt.reshape(N, C, H, W)
    charb_sum = jnp.sum(charb_p[:, :, 0, 0])
    face_sq_sum = jnp.sum(face_p[:, :, 0, 0])
    return x_tidle, charb_sum, face_sq_sum, N * C * H * W


# --------------------------------------------------------------------------------------
# StyleLoss: |Gram(a) - Gram(b)| per batch element; hw contraction is tiled (MXU) with
# (ch, ch) f32 VMEM accumulators, features fed in their native dtype.
# --------------------------------------------------------------------------------------
def _style_kernel(fa_ref, fb_ref, o_ref, ga_ref, gb_ref, *,
                  inv_scale, hw, hw_tile, ragged):
    k = pl.program_id(1)

    @pl.when(k == 0)
    def _():
        ga_ref[...] = jnp.zeros_like(ga_ref)
        gb_ref[...] = jnp.zeros_like(gb_ref)

    fa = fa_ref[0]                       # (ch, hw_tile), native dtype -> MXU
    fb = fb_ref[0]
    if ragged:
        col = lax.broadcasted_iota(jnp.int32, fa.shape, 1)
        valid = (k * hw_tile + col) < hw
        fa = jnp.where(valid, fa, jnp.zeros_like(fa))
        fb = jnp.where(valid, fb, jnp.zeros_like(fb))

    dn = (((1,), (1,)), ((), ()))        # contract hw axis: f @ f.T
    ga_ref[...] += lax.dot_general(fa, fa, dn, preferred_element_type=jnp.float32)
    gb_ref[...] += lax.dot_general(fb, fb, dn, preferred_element_type=jnp.float32)

    @pl.when(k == pl.num_programs(1) - 1)
    def _():
        o_ref[0] = jnp.abs(ga_ref[...] - gb_ref[...]) * inv_scale


def style_loss_pallas(feat_a, feat_b):
    bs, ch, h, w = feat_a.shape
    hw = h * w
    fa = feat_a.reshape(bs, ch, hw)
    fb = feat_b.reshape(bs, ch, hw)

    itemsize = feat_a.dtype.itemsize
    if hw % _LANES != 0:
        hw_tile = hw
    else:
        sub = _round_up(ch, _SUBLANES)
        hw_cap = (_STYLE_TILE_BYTES // (itemsize * sub)) // _LANES * _LANES
        hw_tile = min(hw, max(_LANES, min(_STYLE_MAX_HW_TILE, hw_cap)))
    K = _cdiv(hw, hw_tile)
    ragged = hw % hw_tile != 0

    kernel = functools.partial(_style_kernel, inv_scale=1.0 / (ch * h * w),
                               hw=hw, hw_tile=hw_tile, ragged=ragged)
    absdiff = pl.pallas_call(
        kernel,
        out_shape=jax.ShapeDtypeStruct((bs, ch, ch), jnp.float32),
        grid_spec=pltpu.PrefetchScalarGridSpec(
            num_scalar_prefetch=0,
            grid=(bs, K),
            in_specs=[pl.BlockSpec((1, ch, hw_tile), lambda b, k: (b, 0, k)),
                      pl.BlockSpec((1, ch, hw_tile), lambda b, k: (b, 0, k))],
            out_specs=pl.BlockSpec((1, ch, ch), lambda b, k: (b, 0, 0)),
            scratch_shapes=[pltpu.VMEM((ch, ch), jnp.float32),
                            pltpu.VMEM((ch, ch), jnp.float32)]),
        compiler_params=pltpu.CompilerParams(
            dimension_semantics=("parallel", "arbitrary"),
            vmem_limit_bytes=_VMEM_LIMIT_BYTES),
        cost_estimate=pl.CostEstimate(
            flops=int(4 * bs * ch * ch * hw),
            transcendentals=0,
            bytes_accessed=int(2 * bs * ch * hw * itemsize + bs * ch * ch * 4)),
    )(fa, fb)
    return jnp.mean(absdiff)             # nn.L1Loss mean over (bs, ch, ch)


# --------------------------------------------------------------------------------------
# GANLoss (hinge) — dependent module; uses the streaming reduce.
# --------------------------------------------------------------------------------------
class GANLossPallas:
    def __init__(self, gan_type="hinge", real_label_val=1.0,
                 fake_label_val=0.0, loss_weight=1.0):
        if gan_type != "hinge":
            raise NotImplementedError(f"GAN type {gan_type} is not implemented.")
        self.gan_type = gan_type
        self.real_label_val = real_label_val
        self.fake_label_val = fake_label_val
        self.loss_weight = loss_weight

    def __call__(self, x, target_is_real, is_disc=False, mask=None):
        # NOTE: target_is_real / is_disc must be static Python bools; `mask` is ignored,
        # matching the reference hinge implementation.
        total = x.size
        if is_disc:
            mode = "hinge_real" if target_is_real else "hinge_fake"
            return _reduce_sum(x, mode) / jnp.float32(total)
        return (_reduce_sum(x, "neg") / jnp.float32(total)) * jnp.float32(self.loss_weight)


# --------------------------------------------------------------------------------------
# RateDistortionPOELICFaceLoss
# --------------------------------------------------------------------------------------
class RateDistortionPOELICFaceLossPallas:
    """Pallas version of the rate-distortion face loss forward pass."""

    def __init__(self, lmbda=0.01, charbonnier_eps=1e-6):
        self.lmbda = lmbda
        self.eps = charbonnier_eps
        self.gan = GANLossPallas()
        # TODO(synk): LPIPS ('net-lin'/'vgg') and the Vgg16 16x16-patch feature extractor
        # require pretrained weights; out['lpips'] is omitted and the style features are
        # taken as explicit inputs instead.

    def __call__(self, output, target, mask,
                 x_tidle_feats=None, target_feats=None):
        N, _, H, W = target.shape
        num_pixels = N * H * W
        out = {}

        # bpp_loss: streaming log-sum per likelihoods tensor.
        bpp = jnp.float32(0.0)
        for lk in output["likelihoods"].values():
            bpp = bpp + _reduce_sum(lk, "log") / (-math.log(2) * num_pixels)
        out["bpp_loss"] = bpp

        x_hat = output["x_hat"]
        x_tidle, charb_sum, face_sq_sum, total = _fused_distortion(
            x_hat, target, mask, self.eps)
        out["x_tidle"] = x_tidle
        out["charbonnier"] = charb_sum
        out["face_loss"] = face_sq_sum / jnp.float32(total)

        if x_tidle_feats is not None and target_feats is not None:
            style = jnp.float32(0.0)
            for fa, fb in zip(x_tidle_feats[:4], target_feats[:4]):
                style = style + style_loss_pallas(fa, fb)
            out["style_loss"] = style
        return out


if __name__ == "__main__":
    key = jax.random.PRNGKey(0)
    k = jax.random.split(key, 16)

    N, C, H, W = 2, 3, 32, 32
    target = jax.random.normal(k[0], (N, C, H, W), jnp.float32)
    x_hat = target + 0.1 * jax.random.normal(k[1], (N, C, H, W), jnp.float32)
    mask = (jax.random.uniform(k[2], (N, 1, H, W)) > 0.5).astype(jnp.float32)

    # One large likelihood tensor (Pallas streaming reduce, 2-step parallel grid) and one
    # tiny one (routes through the XLA fallback, per perf feedback).
    lk_y = jax.random.uniform(k[3], (N, 64, 16, 16), jnp.float32, 1e-3, 1.0)
    lk_z = jax.random.uniform(k[4], (N, 32, 4, 4), jnp.float32, 1e-3, 1.0)
    output = {"x_hat": x_hat, "likelihoods": {"y": lk_y, "z": lk_z}}

    # Stand-in VGG feature pyramids (real Vgg16 needs pretrained weights).  The first one
    # is large enough to exercise the tiled (multi-K) Gram accumulation.
    feat_shapes = [(N, 8, 128, 128), (N, 16, 16, 16), (N, 32, 8, 8), (N, 64, 4, 4)]
    feats_pred = [jax.random.normal(k[5 + j], s, jnp.float32)
                  for j, s in enumerate(feat_shapes)]
    feats_tgt = [f + 0.3 * jax.random.normal(k[9 + j], f.shape, jnp.float32)
                 for j, f in enumerate(feats_pred)]

    loss_mod = RateDistortionPOELICFaceLossPallas(lmbda=0.01)
    out = loss_mod(output, target, mask,
                   x_tidle_feats=feats_pred, target_feats=feats_tgt)

    gan_mod = GANLossPallas()
    d_pred = jax.random.normal(k[13], (2, 1, 128, 128), jnp.float32)
    g_loss = gan_mod(d_pred, True, is_disc=False)
    d_real = gan_mod(d_pred, True, is_disc=True)
    d_fake = gan_mod(d_pred, False, is_disc=True)

    jax.block_until_ready((out["bpp_loss"], out["x_tidle"], out["charbonnier"],
                           out["face_loss"], out["style_loss"],
                           g_loss, d_real, d_fake))

    # --- plain-JAX reference checks ---------------------------------------------------
    num_pixels = N * H * W
    mk = jnp.broadcast_to(mask, target.shape)
    ref_bpp = (jnp.sum(jnp.log(lk_y)) + jnp.sum(jnp.log(lk_z))) / (-math.log(2) * num_pixels)
    ref_xt = mk * target + (1 - mk) * x_hat
    ref_charb = jnp.sum(jnp.sqrt(((1 - mk) * x_hat - target) ** 2 + 1e-12))
    ref_face = jnp.mean((mk * target - mk * x_hat) ** 2)

    def gram(f):
        b, c, hh, ww = f.shape
        fm = f.reshape(b, c, hh * ww)
        return jnp.einsum("bik,bjk->bij", fm, fm,
                          precision=lax.Precision.HIGHEST) / (c * hh * ww)

    ref_style = sum(jnp.mean(jnp.abs(gram(fp) - gram(ft)))
                    for fp, ft in zip(feats_pred, feats_tgt))
    ref_g = -jnp.mean(d_pred)
    ref_dr = jnp.mean(jnp.maximum(1.0 - d_pred, 0.0))
    ref_df = jnp.mean(jnp.maximum(1.0 + d_pred, 0.0))

    def ok(a, b, rtol=1e-4, atol=1e-5):
        return bool(jnp.allclose(a, b, rtol=rtol, atol=atol))

    assert ok(out["bpp_loss"], ref_bpp), (out["bpp_loss"], ref_bpp)
    assert ok(out["x_tidle"], ref_xt)
    assert ok(out["charbonnier"], ref_charb), (out["charbonnier"], ref_charb)
    assert ok(out["face_loss"], ref_face), (out["face_loss"], ref_face)
    assert ok(out["style_loss"], ref_style, rtol=2e-3), (out["style_loss"], ref_style)
    assert ok(g_loss, ref_g) and ok(d_real, ref_dr) and ok(d_fake, ref_df)

    print("KERNEL_OK")
</pallas_src>

<mosaic_0001>
module attributes {stable_mosaic.version = 11 : i64} {
  func.func @_reduce_kernel(%arg0: i32, %arg1: memref<128x128xf32, #tpu.memory_space<vmem>>, %arg2: memref<1x8x128xf32, #tpu.memory_space<vmem>>) attributes {dimension_semantics = [#tpu.dimension_semantics<parallel>], iteration_bounds = array<i64: 2>, scalar_prefetch = 0 : i64, scratch_operands = 0 : i64, tpu.core_type = #tpu.core_type<tc>, window_params = [{transform_indices = @transform_0, window_bounds = array<i64: 128, 128>}, {transform_indices = @transform_1, window_bounds = array<i64: 1, 8, 128>}]} {
    %c0 = arith.constant 0 : index
    %c0_0 = arith.constant 0 : index
    %0 = vector.load %arg1[%c0, %c0_0] : memref<128x128xf32, #tpu.memory_space<vmem>>, vector<128x128xf32>
    %1 = math.log %0 : vector<128x128xf32>
    %2 = vector.shape_cast %1 : vector<128x128xf32> to vector<16x8x128xf32>
    %cst = arith.constant dense<0.000000e+00> : vector<8x128xf32>
    %3 = vector.multi_reduction <add>, %2, %cst [0] : vector<16x8x128xf32> to vector<8x128xf32>
    %4 = vector.shape_cast %3 : vector<8x128xf32> to vector<1x8x128xf32>
    %c0_1 = arith.constant 0 : index
    %c0_2 = arith.constant 0 : index
    %c0_3 = arith.constant 0 : index
    %5 = vector.load %arg2[%c0_1, %c0_2, %c0_3] : memref<1x8x128xf32, #tpu.memory_space<vmem>>, vector<1x8x128xf32>
    tpu.vector_store %arg2[%c0_1, %c0_2, %c0_3], %4 {strides = array<i32>} : memref<1x8x128xf32, #tpu.memory_space<vmem>>, vector<1x8x128xf32>,
    return
  }
  func.func @transform_0(%arg0: i32) -> (i32, i32) {
    %c0_i32 = arith.constant 0 : i32
    %c0_i32_0 = arith.constant 0 : i32
    return %arg0, %c0_i32 : i32, i32
  }
  func.func @transform_1(%arg0: i32) -> (i32, i32, i32) {
    %c0_i32 = arith.constant 0 : i32
    %c0_i32_0 = arith.constant 0 : i32
    %c0_i32_1 = arith.constant 0 : i32
    return %arg0, %c0_i32, %c0_i32_0 : i32, i32, i32
  }
}

</mosaic_0001>

<bundles_post_ra>
// kernel: tpu_custom_call.1
= control target key start
LH: loop header
LB: loop body
LE: loop exit
PB: predicated region body
PF: predicated region fallthrough
CT: control target
= control target key end

     0   :  { %6 = vsyncpa [#allocation3], 0  ;;  %s645_s0 = inlined_call_operand.hbm [shape: f32[256,128], index: 0, kind: input, shape index: {}]   ;;  %s646_s1 = inlined_call_operand.hbm [shape: f32[2,8,128], index: 1, kind: output, shape index: {}]  }
   0x1   :  { %8 = vsyncpa [#allocation3 + $0x1], 0 }
   0x2   :  { %9 = vsyncpa [#allocation4], 0 }
   0x3   :  { %11 = vsyncpa [#allocation4 + $0x1], 0  ;;  %s486_s6 = smov 0   ;;  %s488_s7 = smov 0  }
   0x4   :  { %s490_s8 = smov 0   ;;  %s492_s9 = smov 0  }
   0x5 LB: > { %s507_s10 = sadd.s32 4294967295, %s470_s9   ;;  %s284_s11 = sadd.s32 4294967294, %s470_s9   ;;  %s470_s9 = sphi %s492_s9, %s661_s9   ;;  %s466_s8 = sphi %s490_s8, %s660_s8   ;;  %s462_s7 = sphi %s488_s7, %s659_s7   ;;  %s458_s6 = sphi %s486_s6, %s658_s6  }
   0x6   : > { %s511_s12 = sadd.s32 1, %s470_s9   ;;  %s24_s13 = sadd.s32 1, %s466_s8 }
   0x7   : > { %s21_s14 = ssub.s32 %s470_s9, %s511_s12  ;;  %p31_p0 = scmp.ne.s32.totalorder %s466_s8, %s462_s7 }
   0x8   : > { %p22_p1 = scmp.eq.s32.totalorder %s21_s14, 0  ;;  %p32_p2 = scmp.eq.s32.totalorder %s470_s9, 0 }
   0x9   : > { %p37_p3 = scmp.ne.s32.totalorder %s462_s7, %s458_s6  ;;  %p38_p4 = scmp.eq.s32.totalorder %s507_s10, 0 }
   0xa   : > { %s523_s15 = scalar_select %p22_p1, %s466_s8, %s24_s13  }
   0xb   : > { %p525_p5 = por %p32_p2, %p31_p0  ;;  %p529_p6 = por %p38_p4, %p37_p3 }
   0xc   : > { %p61_p7 = scmp.eq.s32.totalorder %s507_s10, 1  ;;  %p67_p8 = scmp.eq.s32.totalorder %s284_s11, 1 }
   0xd   : > { %s650_s17 = scalar_select %p529_p6, 1, 0 }
   0xe   : > { %p310_p10 = scmp.lt.s32.totalorder %s470_s9, 2  ;;  %p536_p11 = por %p61_p7, %p31_p0 }
   0xf   : > { %p540_p12 = por %p67_p8, %p37_p3  ;;  %s87_s20 = sand.u32 1, %s466_s8  }
  0x10   : > { %s651_s18 = scalar_select %p536_p11, 1, 0 }
  0x11   : > { %s652_s19 = scalar_select %p540_p12, 1, 0 }
  0x12   : > { %s297_s21 = sshll.u32 %s470_s9, 11  ;;  %s287_s22 = sshll.u32 %s87_s20, 7 }
  0x13   : > { %s549_s25 = scalar_lea.hbm %s645_s0, %s297_s21  ;;  %s91_s26 = scalar_lea.vmem [#allocation2], %s287_s22 }
  0x14   : > { %s98_s27 = sshll.u32 %s91_s26, 4  ;;  %p553_p13 = pnand %p310_p10, %p525_p5  ;;  %s557_s27 = int_to_ptr.vmem [resolvable:$true] %s98_s27 }
  0x15   : > { %s559_s29 = scalar_lea.sflag [#allocation3], %s87_s20  ;;  %s378_s30 = scalar_lea.hbm %s549_s25, 2048 }
  0x16   : > { %p379_p0 = scmp.ne.s32.totalorder %s549_s25, %s378_s30  ;;  %p380_p1 = pneg %p553_p13 }
  0x17   : > { %s383_s4 = scalar_lea.hbm %s645_s0, 4096  ;;  %p384_p4 = scmp.lt.s32.totalorder %s549_s25, %s645_s0 }
  0x18   : > { %p381_p2 = pnand %p380_p1, %p379_p0  ;;  %p385_p5 = scmp.lt.s32.totalorder %s383_s4, %s378_s30 }
  0x1a   : > { %p382_p3 = pneg %p381_p2  ;;  %p386_p7 = por %p385_p5, %p384_p4 }
  0x1c   : > { %p387_p8 = pnand %p386_p7, %p382_p3 }
  0x1e   : > { %390 = shalt.err (!%p387_p8)
}
  0x1f   : > { %s391_s13 = scalar_lea.vmem %s557_s27, 2048  ;;  %s472_s14 = smov [#allocation2]  }
  0x20   : > { %p392_p10 = scmp.ne.s32.totalorder %s557_s27, %s391_s13  ;;  %s396_s16 = sshll.u32 %s472_s14, 4  ;;  %s397_s16 = int_to_ptr.vmem [resolvable:$false] %s396_s16 }
  0x21   : > { %s398_s20 = scalar_lea.vmem %s397_s16, 4096  ;;  %p399_p2 = scmp.lt.s32.totalorder %s557_s27, %s397_s16 }
  0x22   : > { %p394_p9 = pnand %p392_p10, %p380_p1  ;;  %p400_p12 = scmp.lt.s32.totalorder %s398_s20, %s391_s13 }
  0x24   : > { %p395_p0 = pneg %p394_p9  ;;  %p401_p11 = por %p400_p12, %p399_p2 }
  0x26   : > { %p402_p6 = pnand %p401_p11, %p395_p0 }
  0x28   : > { %405 = shalt.err (!%p402_p6)
}
  0x29   : > { %s473_s21 = smov 128   ;;  %s474_s22 = smov 8  }
  0x2a   : > { %305 = dma.hbm_to_vmem [thread:$0]  (!%p553_p13), %s549_s25, 2048, %s557_s27, %s559_s29, %s473_s21, %s473_s21, %s474_s22  }
  0x2b   : > { %p290_p9 = scmp.ge.s32.totalorder %s470_s9, 1  ;;  %p106_p1 = scmp.lt.s32.totalorder %s470_s9, 3 }
  0x2d   : > { %p107_p3 = pnand %p290_p9, %p106_p1 }
  0x2e   : > { %s583_s23 = sand.u32 (!%p107_p3), 1, %s462_s7   ;;  %p654_p6 = scmp.ne.s32.totalorder (!%p107_p3), %s650_s17, 0 }
  0x2f   : > { %110 = sbr.rel (%p107_p3) target bundleno = 114 (0x72), region = 24  ;;  %s291_s24 = sshll.u32 (!%p107_p3), %s583_s23, 7 }
  0x30   : > { %s113_s26 = scalar_lea.sflag (!%p107_p3), [#allocation3], %s583_s23  ;;  %s587_s30 = scalar_lea.vmem (!%p107_p3), [#allocation2], %s291_s24 }
  0x34   : > { %449 = dma.done.wait (%p654_p6), %s113_s26, 2048  }
  0x35   : > { %451 = vsyncadd (%p654_p6), %s113_s26, 4294965248  ;;  %v136_v0 = vld [vmem:[%s587_s30] sm:$0xff]  ;;  %v137_v1 = vld [vmem:[%s587_s30 + $0x8] sm:$0xff]  ;;  %s292_s17 = sshll.u32 %s583_s23, 3  ;;  %s294_s28 = sshll.u32 %s507_s10, 7 }
  0x36   : > { %v138_v2 = vld [vmem:[%s587_s30 + $0x10] sm:$0xff]  ;;  %v139_v3 = vld [vmem:[%s587_s30 + $0x18] sm:$0xff]  ;;  %346 = vlog2.f32 %v136_v0  ;;  %v140_v4 = vld [vmem:[%s587_s30 + $0x20] sm:$0xff]  ;;  %s134_s25 = scalar_lea.vmem [#allocation5], %s292_s17  ;;  %s212_s3 = scalar_lea.hbm %s646_s1, %s294_s28 }
  0x37   : > { %348 = vlog2.f32 %v137_v1  ;;  %v141_v5 = vld [vmem:[%s587_s30 + $0x28] sm:$0xff]  ;;  %v142_v6 = vld [vmem:[%s587_s30 + $0x30] sm:$0xff]  ;;  %v143_v7 = vld [vmem:[%s587_s30 + $0x38] sm:$0xff]  ;;  %s214_s27 = sshll.u32 %s134_s25, 4  ;;  %s201_s4 = scalar_lea.sflag [#allocation4], %s583_s23  ;;  %s215_s27 = int_to_ptr.vmem [resolvable:$true] %s214_s27 }
  0x38   : > { %350 = vlog2.f32 %v138_v2  ;;  %v144_v8 = vld [vmem:[%s587_s30 + $0x40] sm:$0xff]  ;;  %v145_v9 = vld [vmem:[%s587_s30 + $0x48] sm:$0xff]  ;;  %v146_v10 = vld [vmem:[%s587_s30 + $0x50] sm:$0xff]  ;;  %s406_s5 = scalar_lea.vmem %s215_s27, 128  ;;  %p655_p12 = scmp.ne.s32.totalorder %s651_s18, 0 }
  0x39   : > { %352 = vlog2.f32 %v139_v3  ;;  %v147_v13 = vld [vmem:[%s587_s30 + $0x58] sm:$0xff]  ;;  %v148_v18 = vld [vmem:[%s587_s30 + $0x60] sm:$0xff]  ;;  %v149_v24 = vld [vmem:[%s587_s30 + $0x68] sm:$0xff]  ;;  %p407_p11 = scmp.ne.s32.totalorder %s215_s27, %s406_s5  ;;  %s475_s11 = smov [#allocation5]  }
  0x3a   : > { %354 = vlog2.f32 %v140_v4  ;;  %v150_v28 = vld [vmem:[%s587_s30 + $0x70] sm:$0xff]  ;;  %v151_v32 = vld [vmem:[%s587_s30 + $0x78] sm:$0xff]  ;;  %s410_s13 = sshll.u32 %s475_s11, 4  ;;  %s411_s13 = int_to_ptr.vmem [resolvable:$false] %s410_s13 }
  0x3b   : > { %356 = vlog2.f32 %v141_v5  ;;  %p408_p13 = pnand %p407_p11, %p655_p12  ;;  %s412_s14 = scalar_lea.vmem %s411_s13, 256 }
  0x3c   : > { %358 = vlog2.f32 %v142_v6  ;;  %p413_p5 = scmp.lt.s32.totalorder %s215_s27, %s411_s13  ;;  %p414_p7 = scmp.lt.s32.totalorder %s412_s14, %s406_s5 }
  0x3d   : > { %360 = vlog2.f32 %v143_v7  ;;  %p409_p4 = pneg %p408_p13 }
  0x3e   : > { %362 = vlog2.f32 %v144_v8  ;;  %p415_p8 = por %p414_p7, %p413_p5 }
  0x3f   : > { %364 = vlog2.f32 %v145_v9 }
  0x40   : > { %366 = vlog2.f32 %v146_v10  ;;  %p416_p10 = pnand %p415_p8, %p409_p4 }
  0x41   : > { %368 = vlog2.f32 %v147_v13 }
  0x42   : > { %370 = vlog2.f32 %v148_v18 }
  0x43   : > { %v347_v11 = vpop.eup %346  ;;  %372 = vlog2.f32 %v149_v24 }
  0x44   : > { %v349_v12 = vpop.eup %348  ;;  %v153_v14 = vmul.f32 0.6931472, %v347_v11  ;;  %374 = vlog2.f32 %v150_v28 }
  0x45   : > { %v351_v15 = vpop.eup %350  ;;  %v155_v16 = vmul.f32 0.6931472, %v349_v12  ;;  %376 = vlog2.f32 %v151_v32 }
  0x46   : > { %v353_v17 = vpop.eup %352  ;;  %v157_v19 = vmul.f32 0.6931472, %v351_v15 }
  0x47   : > { %v355_v20 = vpop.eup %354  ;;  %v159_v21 = vmul.f32 0.6931472, %v353_v17  ;;  %v184_v22 = vadd.f32 %v155_v16, %v153_v14 }
  0x48   : > { %v357_v23 = vpop.eup %356  ;;  %v161_v25 = vmul.f32 0.6931472, %v355_v20 }
  0x49   : > { %v185_v26 = vadd.f32 %v184_v22, %v157_v19  ;;  %v359_v27 = vpop.eup %358  ;;  %v163_v29 = vmul.f32 0.6931472, %v357_v23 }
  0x4a   : > { %v361_v31 = vpop.eup %360  ;;  %v165_v33 = vmul.f32 0.6931472, %v359_v27 }
  0x4b   : > { %v186_v30 = vadd.f32 %v185_v26, %v159_v21  ;;  %v363_v35 = vpop.eup %362  ;;  %v167_v36 = vmul.f32 0.6931472, %v361_v31 }
  0x4c   : > { %v365_v38 = vpop.eup %364  ;;  %v169_v39 = vmul.f32 0.6931472, %v363_v35 }
  0x4d   : > { %v187_v34 = vadd.f32 %v186_v30, %v161_v25  ;;  %v367_v41 = vpop.eup %366  ;;  %v171_v42 = vmul.f32 0.6931472, %v365_v38 }
  0x4e   : > { %v369_v44 = vpop.eup %368  ;;  %v173_v45 = vmul.f32 0.6931472, %v367_v41 }
  0x4f   : > { %v188_v37 = vadd.f32 %v187_v34, %v163_v29  ;;  %v371_v47 = vpop.eup %370  ;;  %v175_v48 = vmul.f32 0.6931472, %v369_v44 }
  0x50   : > { %v373_v50 = vpop.eup %372  ;;  %v177_v51 = vmul.f32 0.6931472, %v371_v47 }
  0x51   : > { %v189_v40 = vadd.f32 %v188_v37, %v165_v33  ;;  %v375_v53 = vpop.eup %374  ;;  %v179_v54 = vmul.f32 0.6931472, %v373_v50 }
  0x52   : > { %v377_v56 = vpop.eup %376  ;;  %v181_v57 = vmul.f32 0.6931472, %v375_v53 }
  0x53   : > { %v190_v43 = vadd.f32 %v189_v40, %v167_v36  ;;  %v183_v59 = vmul.f32 0.6931472, %v377_v56 }
  0x55   : > { %v191_v46 = vadd.f32 %v190_v43, %v169_v39 }
  0x57   : > { %v192_v49 = vadd.f32 %v191_v46, %v171_v42 }
  0x59   : > { %v193_v52 = vadd.f32 %v192_v49, %v173_v45 }
  0x5b   : > { %v194_v55 = vadd.f32 %v193_v52, %v175_v48 }
  0x5d   : > { %v195_v58 = vadd.f32 %v194_v55, %v177_v51 }
  0x5f   : > { %v196_v60 = vadd.f32 %v195_v58, %v179_v54 }
  0x61   : > { %v197_v61 = vadd.f32 %v196_v60, %v181_v57 }
  0x63   : > { %v198_v62 = vadd.f32 %v197_v61, %v183_v59 }
  0x65   : > { %199 = vst [vmem:[%s134_s25] sm:$0xff] %v198_v62 }
  0x66   : > { %419 = shalt.err (!%p416_p10)
}
  0x67   : > { %s420_s10 = scalar_lea.hbm %s212_s3, 128  ;;  %s424_s21 = scalar_lea.hbm %s646_s1, 256 }
  0x68   : > { %p421_p0 = scmp.ne.s32.totalorder %s212_s3, %s420_s10  ;;  %p425_p1 = scmp.lt.s32.totalorder %s212_s3, %s646_s1 }
  0x69   : > { %p426_p3 = scmp.lt.s32.totalorder %s424_s21, %s420_s10 }
  0x6a   : > { %p422_p2 = pnand %p421_p0, %p655_p12 }
  0x6b   : > { %p427_p6 = por %p426_p3, %p425_p1 }
  0x6c   : > { %p423_p9 = pneg %p422_p2 }
  0x6e   : > { %p428_p11 = pnand %p427_p6, %p423_p9 }
  0x70   : > { %431 = shalt.err (!%p428_p11)
}
  0x71   : > { %300 = dma.vmem_to_hbm [thread:$0]  (%p655_p12), %s215_s27, 128, %s212_s3, %s201_s4  }
  0x72 PF: > { %s226_s24 = sand.u32 1, %s458_s6   ;;  %p656_p13 = scmp.ne.s32.totalorder %s652_s19, 0 }
  0x73   : > { %p657_p4 = scmp.ge.s32.totalorder %s470_s9, 2  ;;  %s227_s26 = scalar_lea.sflag [#allocation4], %s226_s24 }
  0x75   : > { %p307_p5 = pnand %p657_p4, %p656_p13 }
  0x77   : > { %p308_p7 = pneg %p307_p5 }
  0x79   : > { %453 = dma.done.wait (%p308_p7), %s227_s26, 128  }
  0x7a   : > { %455 = vsyncadd (%p308_p7), %s227_s26, 4294967168  ;;  %p14_p8 = scmp.ge.s32.totalorder %s511_s12, 4   ;;  %s658_s6 = smov %s462_s7 }
  0x7b   : > { %s659_s7 = smov %s466_s8  ;;  %s660_s8 = smov %s523_s15 }
  0x7c   : > { %s661_s9 = smov %s511_s12  ;;  %16 = sbr.rel (!%p14_p8) target bundleno = 5 (0x5), region = 69 }
  0x81   :  { %232 = vsyncpa [#allocation3], 1 }
  0x82   :  { %234 = vsyncpa [#allocation3 + $0x1], 1 }
  0x83   :  { %235 = vsyncpa [#allocation4], 1 }
  0x84   :  { %237 = vsyncpa [#allocation4 + $0x1], 1 }

</bundles_post_ra>
